<compile_context>
chip_gen: v6e
topology: v6e:2x2x1
jax: 0.10.0
libtpu: 0.0.40
codegen_flags: <defaults>
</compile_context>

<pallas_src>
import jax
import jax.numpy as jnp
from jax.experimental import pallas as pl
from jax.experimental.pallas import tpu as pltpu


# -----------------------------------------------------------------------------
# helpers
# -----------------------------------------------------------------------------
def _round_up(x, m):
    return ((x + m - 1) // m) * m


def _vmem_capacity_bytes():
    """Per-core VMEM capacity; conservative v7x per-TC fallback if query fails."""
    try:
        cap = int(pltpu.get_tpu_info().vmem_capacity_bytes)
        if cap > 0:
            return cap
    except Exception:
        pass
    return 64 * 1024 * 1024


def _pick_batch_tile(B, bytes_per_row, budget_bytes, align):
    """Largest batch tile whose total live VMEM (double-buffered inputs/output
    + in-kernel temps, expressed via `bytes_per_row`) fits `budget_bytes`."""
    tb = max(1, int(budget_bytes) // max(1, int(bytes_per_row)))
    # Keep >=2 grid steps when the batch is big enough so ("parallel",) can
    # shard the batch axis across v7x's two TensorCores.
    if B >= 2 * align:
        tb = min(tb, _round_up(pl.cdiv(B, 2), align))
    if tb >= B:
        return B
    return max(align, (tb // align) * align)


# -----------------------------------------------------------------------------
# Kernel A: get_log_p for T >= 128 (lane-dense 3D blocks, no sidecar).
# -----------------------------------------------------------------------------
def _get_log_p_kernel_3d(logp_ref, pi_next_ref, out_ref):
    # logp_ref:    (TB, T, T) native dtype (f32/bf16)
    # pi_next_ref: (TB, T) int32, pi_next[b, j] = pi[b, j+1] (wraps at j=T-1,
    #              masked out below)
    # out_ref:     (TB, 1) f32
    T = logp_ref.shape[-1]
    logp = logp_ref[...]                                   # stay in native dtype
    pi_next = pi_next_ref[...]

    # (1,1,T) lane iota; the compare broadcasts to (TB,T,T) for free.
    col = jax.lax.broadcasted_iota(jnp.int32, (1, 1, T), 2)
    sel = col == pi_next[:, :, None]                       # one-hot per step row

    # Lane reduce in native dtype (exact: exactly one selected element/row),
    # then cast the tiny (TB,T) partial sums to f32 for accumulation.
    zero = jnp.zeros((), dtype=logp.dtype)
    per_step = jnp.sum(jnp.where(sel, logp, zero), axis=-1)        # (TB, T)
    per_step = per_step.astype(jnp.float32)

    # Mask the wrapped-around last step (torch gather covers steps 0..T-2).
    step = jax.lax.broadcasted_iota(jnp.int32, (1, T), 1)
    per_step = jnp.where(step < T - 1, per_step, 0.0)

    out_ref[...] = jnp.sum(per_step, axis=-1, keepdims=True)       # (TB, 1)


# -----------------------------------------------------------------------------
# Kernel B: get_log_p for T < 128 (flattened lane-dense rows + int8 one-hot
# select mask built in the wrapper).
# -----------------------------------------------------------------------------
def _get_log_p_kernel_flat(logp_ref, sel_ref, out_ref):
    # logp_ref: (TB, T*T) native dtype; sel_ref: (TB, T*T) int8 one-hot mask
    # (already includes the "step < T-1" validity); out_ref: (TB, 1) f32.
    logp = logp_ref[...]
    keep = sel_ref[...] != 0
    zero = jnp.zeros((), dtype=logp.dtype)
    # where (not multiply): log-probs may be -inf and (-inf)*0 would be NaN.
    vals = jnp.where(keep, logp, zero).astype(jnp.float32)         # f32 accumulate
    out_ref[...] = jnp.sum(vals, axis=-1, keepdims=True)


def get_log_p(_log_p, pi, *, force_pallas=False):
    """args:
        _log_p: (batch, city_t, city_t) float32 / bfloat16
        pi:     (batch, city_t) int predicted tour
       return:  (batch, 1) f32 sum of log-prob of the chosen targets
    """
    B, T, _ = _log_p.shape
    itemsize = jnp.dtype(_log_p.dtype).itemsize

    # Toy problems: kernel launch + per-step overhead dominates; plain XLA is
    # strictly faster (per perf review).  The demo forces the Pallas path.
    if not force_pallas and B * T * T * itemsize < (1 << 20):
        return jnp.sum(
            jnp.take_along_axis(
                _log_p[:, : T - 1, :], pi[:, 1:, None].astype(jnp.int32), axis=2
            ),
            axis=1,
        ).astype(jnp.float32)

    # Tiny (B,T) int32 shift done once in the wrapper; avoids unaligned
    # in-kernel slices (which materialize VMEM copies on TPU).
    pi_next = jnp.roll(pi.astype(jnp.int32), shift=-1, axis=1)

    cap = _vmem_capacity_bytes()
    tile_budget = int(cap * 0.45)                 # all buffers, both pipeline slots
    vmem_limit = min(int(cap * 0.9), 128 * 1024 * 1024)
    cparams = pltpu.CompilerParams(
        dimension_semantics=("parallel",),
        vmem_limit_bytes=vmem_limit,
    )

    if T >= 128:
        # 3D blocks are already lane-dense; no sidecar HBM traffic.
        sub = 8 * max(1, 4 // itemsize)           # sublane packing (f32:8, bf16:16)
        logp_row = _round_up(T, sub) * _round_up(T, 128) * itemsize
        row_bytes = (
            logp_row * (2 + 2)                    # double-buffer + in-kernel temps
            + 2 * _round_up(T, 128) * 4           # pi_next tile, double-buffered
            + 2 * 128 * 4                         # (TB,1) output, double-buffered
        )
        TB = _pick_batch_tile(B, row_bytes, tile_budget, align=8)
        grid = (pl.cdiv(B, TB),)
        return pl.pallas_call(
            _get_log_p_kernel_3d,
            out_shape=jax.ShapeDtypeStruct((B, 1), jnp.float32),
            grid=grid,
            in_specs=[
                pl.BlockSpec((TB, T, T), lambda i: (i, 0, 0)),
                pl.BlockSpec((TB, T), lambda i: (i, 0)),
            ],
            out_specs=pl.BlockSpec((TB, 1), lambda i: (i, 0)),
            compiler_params=cparams,
        )(_log_p, pi_next)

    # T < 128: a (TB, T, T) block would fill only T of 128 lanes (≈T/128
    # DMA/VMEM/VPU density).  Flatten to lane-dense (B, T*T) rows (free,
    # contiguous reshape) and build the int8 one-hot select mask in the
    # wrapper (T <= 127 always fits int8); the mask already folds in the
    # "step < T-1" validity so the kernel is pure select + lane reduce.
    L = T * T
    col = jnp.arange(T, dtype=jnp.int32)
    step_valid = jnp.arange(T, dtype=jnp.int32) < (T - 1)
    sel = (pi_next[:, :, None] == col[None, None, :]) & step_valid[None, :, None]
    sel_flat = sel.reshape(B, L).astype(jnp.int8)
    logp_flat = _log_p.reshape(B, L)

    padded_L = _round_up(L, 128)
    row_bytes = (
        padded_L * itemsize * 2                   # logp tile, double-buffered
        + padded_L * 1 * 2                        # int8 mask tile, double-buffered
        + padded_L * 4 + padded_L                 # in-kernel f32 temp + bool mask
        + 2 * 128 * 4                             # (TB,1) output, double-buffered
    )
    # align=32 keeps the int8 block's second-minor dim on its native tiling
    # (or TB == B), sidestepping sub-tile int8 layouts.
    TB = _pick_batch_tile(B, row_bytes, tile_budget, align=32)
    grid = (pl.cdiv(B, TB),)
    return pl.pallas_call(
        _get_log_p_kernel_flat,
        out_shape=jax.ShapeDtypeStruct((B, 1), jnp.float32),
        grid=grid,
        in_specs=[
            pl.BlockSpec((TB, L), lambda i: (i, 0)),
            pl.BlockSpec((TB, L), lambda i: (i, 0)),
        ],
        out_specs=pl.BlockSpec((TB, 1), lambda i: (i, 0)),
        compiler_params=cparams,
    )(logp_flat, sel_flat)


# -----------------------------------------------------------------------------
# Terminal reward reductions (tail of Model.single_thread_job).
# Two maxes over a length-`agent_amount` vector cost nanoseconds of VPU but a
# dedicated pallas_call pays a full launch + DMA round trip, so this stays in
# plain XLA (it fuses into surrounding ops for free).
# -----------------------------------------------------------------------------
def terminal_rewards(cost_set, reward_set, num_actions):
    max_cost = jnp.max(cost_set.astype(jnp.float32))
    max_reward = jnp.max(reward_set.astype(jnp.float32))
    per_agent_reward = jnp.full((num_actions,), -max_reward, dtype=jnp.float32)
    average_reward = -max_cost
    max_length = max_cost
    return per_agent_reward, average_reward, max_length


if __name__ == "__main__":
    key = jax.random.PRNGKey(0)
    k1, k2, k3, k4, k5, k6 = jax.random.split(key, 6)

    # --- small-T problem (flattened lane-dense Pallas path) ---
    batch, city_t = 16, 20
    logits = jax.random.normal(k1, (batch, city_t, city_t), dtype=jnp.float32)
    _log_p = jax.nn.log_softmax(logits, axis=-1)
    pi = jax.random.randint(k2, (batch, city_t), 0, city_t, dtype=jnp.int32)

    log_p = jax.block_until_ready(get_log_p(_log_p, pi, force_pallas=True))
    ref_log_p = jnp.sum(
        jnp.take_along_axis(_log_p[:, : city_t - 1, :], pi[:, 1:, None], axis=2),
        axis=1,
    )
    assert jnp.allclose(log_p, ref_log_p, atol=1e-4, rtol=1e-5), (log_p, ref_log_p)

    # Default (auto) path falls back to XLA at this toy size; must match too.
    log_p_auto = jax.block_until_ready(get_log_p(_log_p, pi))
    assert jnp.allclose(log_p_auto, ref_log_p, atol=1e-4, rtol=1e-5)

    # --- large-T problem (3D lane-dense Pallas path) ---
    batch2, city_t2 = 8, 128
    logits2 = jax.random.normal(k3, (batch2, city_t2, city_t2), dtype=jnp.float32)
    _log_p2 = jax.nn.log_softmax(logits2, axis=-1)
    pi2 = jax.random.randint(k4, (batch2, city_t2), 0, city_t2, dtype=jnp.int32)

    log_p2 = jax.block_until_ready(get_log_p(_log_p2, pi2, force_pallas=True))
    ref_log_p2 = jnp.sum(
        jnp.take_along_axis(_log_p2[:, : city_t2 - 1, :], pi2[:, 1:, None], axis=2),
        axis=1,
    )
    assert jnp.allclose(log_p2, ref_log_p2, atol=1e-4, rtol=1e-5), (log_p2, ref_log_p2)

    # --- terminal reward reductions (pure XLA by design) ---
    agent_amount, num_actions = 4, 8
    cost_set = jax.random.uniform(k5, (agent_amount,), dtype=jnp.float32) * 10.0
    reward_set = jax.random.uniform(k6, (agent_amount,), dtype=jnp.float32) * 10.0
    per_agent_reward, average_reward, max_length = jax.block_until_ready(
        terminal_rewards(cost_set, reward_set, num_actions)
    )
    assert jnp.allclose(per_agent_reward, jnp.repeat(-jnp.max(reward_set)[None], num_actions), atol=1e-6)
    assert jnp.allclose(average_reward, -jnp.max(cost_set), atol=1e-6)
    assert jnp.allclose(max_length, jnp.max(cost_set), atol=1e-6)

    print("KERNEL_OK")
</pallas_src>

<mosaic_0001>
module attributes {stable_mosaic.version = 11 : i64} {
  func.func @_get_log_p_kernel_flat(%arg0: i32, %arg1: memref<16x400xf32, #tpu.memory_space<vmem>>, %arg2: memref<16x400xi8, #tpu.memory_space<vmem>>, %arg3: memref<16x1xf32, #tpu.memory_space<vmem>>) attributes {dimension_semantics = [#tpu.dimension_semantics<parallel>], iteration_bounds = array<i64: 1>, scalar_prefetch = 0 : i64, scratch_operands = 0 : i64, tpu.core_type = #tpu.core_type<tc>, window_params = [{transform_indices = @transform_0, window_bounds = array<i64: 16, 400>}, {transform_indices = @transform_1, window_bounds = array<i64: 16, 400>}, {transform_indices = @transform_2, window_bounds = array<i64: 16, 1>}]} {
    %c0 = arith.constant 0 : index
    %c0_0 = arith.constant 0 : index
    %0 = vector.load %arg1[%c0, %c0_0] : memref<16x400xf32, #tpu.memory_space<vmem>>, vector<16x400xf32>
    %c0_1 = arith.constant 0 : index
    %c0_2 = arith.constant 0 : index
    %1 = vector.load %arg2[%c0_1, %c0_2] : memref<16x400xi8, #tpu.memory_space<vmem>>, vector<16x400xi8>
    %c0_i8 = arith.constant 0 : i8
    %2 = vector.broadcast %c0_i8 : i8 to vector<16x400xi8>
    %3 = arith.cmpi ne, %1, %2 : vector<16x400xi8>
    %cst = arith.constant 0.000000e+00 : f32
    %4 = vector.broadcast %cst : f32 to vector<16x400xf32>
    %5 = arith.select %3, %0, %4 : vector<16x400xi1>, vector<16x400xf32>
    %cst_3 = arith.constant dense<0.000000e+00> : vector<16xf32>
    %6 = vector.multi_reduction <add>, %5, %cst_3 [1] : vector<16x400xf32> to vector<16xf32>
    %7 = vector.shape_cast %6 : vector<16xf32> to vector<16x1xf32>
    %c0_4 = arith.constant 0 : index
    %c0_5 = arith.constant 0 : index
    %8 = vector.load %arg3[%c0_4, %c0_5] : memref<16x1xf32, #tpu.memory_space<vmem>>, vector<16x1xf32>
    tpu.vector_store %arg3[%c0_4, %c0_5], %7 {strides = array<i32>} : memref<16x1xf32, #tpu.memory_space<vmem>>, vector<16x1xf32>,
    return
  }
  func.func @transform_0(%arg0: i32) -> (i32, i32) {
    %c0_i32 = arith.constant 0 : i32
    %c0_i32_0 = arith.constant 0 : i32
    return %arg0, %c0_i32 : i32, i32
  }
  func.func @transform_1(%arg0: i32) -> (i32, i32) {
    %c0_i32 = arith.constant 0 : i32
    %c0_i32_0 = arith.constant 0 : i32
    return %arg0, %c0_i32 : i32, i32
  }
  func.func @transform_2(%arg0: i32) -> (i32, i32) {
    %c0_i32 = arith.constant 0 : i32
    %c0_i32_0 = arith.constant 0 : i32
    return %arg0, %c0_i32 : i32, i32
  }
}

</mosaic_0001>

<bundles_post_ra>
// kernel: tpu_custom_call.1
= control target key start
LH: loop header
LB: loop body
LE: loop exit
PB: predicated region body
PF: predicated region fallthrough
CT: control target
= control target key end

     0   :  { %7 = vsyncpa [#allocation3], 0  ;;  %s194_s0 = inlined_call_operand.hbm [shape: f32[16,400], index: 0, kind: input, shape index: {}]   ;;  %s195_s1 = inlined_call_operand.hbm [shape: s8[16,400], index: 1, kind: input, shape index: {}]   ;;  %s196_s2 = inlined_call_operand.vmem [shape: f32[16,1], index: 2, kind: output, shape index: {}]  }
   0x1   :  { %8 = vsyncpa [#allocation5], 0  ;;  %s152_s9 = smov [#allocation2]  }
   0x2   :  { %s14_s10 = sshll.u32 %s152_s9, 4  ;;  %s15_s10 = int_to_ptr.vmem [resolvable:$true] %s14_s10 }
   0x3   :  { %s116_s11 = scalar_lea.vmem %s15_s10, 1024  ;;  %p121_p1 = scmp.lt.s32.totalorder %s15_s10, %s15_s10 }
   0x4   :  { %p117_p0 = scmp.ne.s32.totalorder %s15_s10, %s116_s11  ;;  %p122_p2 = scmp.lt.s32.totalorder %s116_s11, %s116_s11 }
   0x6   :  { %p123_p3 = por %p122_p2, %p121_p1 }
   0x8   :  { %p124_p4 = pnand %p123_p3, %p117_p0 }
   0xa   :  { %127 = shalt.err (!%p124_p4)
}
   0xb   :  { %s153_s12 = smov 512   ;;  %s154_s13 = smov 32  }
   0xc   :  { %20 = dma.hbm_to_vmem [thread:$0]  %s194_s0, 1024, %s15_s10, [#allocation3], %s153_s12, %s153_s12, %s154_s13  }
   0xd   :  { %s155_s16 = smov [#allocation4]  }
   0xe   :  { %s26_s17 = sshll.u32 %s155_s16, 4  ;;  %s27_s17 = int_to_ptr.vmem [resolvable:$true] %s26_s17 }
   0xf   :  { %s136_s18 = scalar_lea.vmem %s27_s17, 256  ;;  %p141_p6 = scmp.lt.s32.totalorder %s27_s17, %s27_s17 }
  0x10   :  { %p137_p5 = scmp.ne.s32.totalorder %s27_s17, %s136_s18  ;;  %p142_p7 = scmp.lt.s32.totalorder %s136_s18, %s136_s18 }
  0x12   :  { %p143_p8 = por %p142_p7, %p141_p6 }
  0x14   :  { %p144_p9 = pnand %p143_p8, %p137_p5 }
  0x16   :  { %147 = shalt.err (!%p144_p9)
}
  0x17   :  { %s156_s19 = smov 128   ;;  %s157_s20 = smov 8  }
  0x18   :  { %32 = dma.hbm_to_vmem [thread:$0]  %s195_s1, 256, %s27_s17, [#allocation5], %s156_s19, %s156_s19, %s157_s20  }
  0x19   :  { %148 = dma.done.wait [#allocation3], 1024  }
  0x1a   :  { %149 = vsyncadd [#allocation3], 4294966272 }
  0x1b   :  { %150 = dma.done.wait [#allocation5], 256  }
  0x1c   :  { %151 = vsyncadd [#allocation5], 4294967040  ;;  %v49_v0 = vld [vmem:[#allocation4] sm:$0xff]  ;;  %v158_v2 = vmov 0   ;;  %v50_v4 = vld [vmem:[#allocation4 + $0x8] sm:$0xff]  ;;  %vm81_vm1 = vcmask 130048  }
  0x1d   :  { %vm51_vm0 = vnez %v49_v0  ;;  %v41_v1 = vld [vmem:[#allocation2] sm:$0xff]  ;;  %v42_v5 = vld [vmem:[#allocation2 + $0x8] sm:$0xff]  ;;  %v43_v6 = vld [vmem:[#allocation2 + $0x10] sm:$0xff]  ;;  %vm52_vm2 = vnez %v50_v4  ;;  %vm92_vm11 = vcmask 7168  }
  0x1e   :  { %v53_v3 = vsel %vm51_vm0, 16843009, %v158_v2  ;;  %v44_v7 = vld [vmem:[#allocation2 + $0x18] sm:$0xff]  ;;  %v54_v19 = vsel %vm52_vm2, 16843009, %v158_v2  ;;  %v45_v20 = vld [vmem:[#allocation2 + $0x20] sm:$0xff] }
  0x1f   :  { %v55_v8 = vunpack.c.0.s8 %v53_v3  ;;  %v56_v9 = vunpack.c.1.s8 %v53_v3  ;;  %v57_v10 = vunpack.c.2.s8 %v53_v3  ;;  %v58_v11 = vunpack.c.3.s8 %v53_v3  ;;  %v46_v21 = vld [vmem:[#allocation2 + $0x28] sm:$0xff]  ;;  %v47_v22 = vld [vmem:[#allocation2 + $0x30] sm:$0xff]  ;;  %v48_v28 = vld [vmem:[#allocation2 + $0x38] sm:$0xff] }
  0x20   :  { %v59_v23 = vunpack.c.0.s8 %v54_v19  ;;  %v60_v24 = vunpack.c.1.s8 %v54_v19  ;;  %v61_v25 = vunpack.c.2.s8 %v54_v19  ;;  %v62_v26 = vunpack.c.3.s8 %v54_v19 }
  0x21   :  { %vm63_vm3 = vcmp.ne.s32.totalorder %v55_v8, 0  ;;  %vm64_vm4 = vcmp.ne.s32.totalorder %v56_v9, 0  ;;  %vm180_vm5 = vcmp.ne.s32.totalorder %v57_v10, 0  ;;  %vm66_vm6 = vcmp.ne.s32.totalorder %v58_v11, 0 }
  0x22   :  { %v71_v13 = vsel %vm63_vm3, %v41_v1, 0.0  ;;  %v72_v14 = vsel %vm64_vm4, %v42_v5, 0.0  ;;  %v73_v15 = vsel %vm180_vm5, %v43_v6, 0.0  ;;  %v74_v16 = vsel %vm66_vm6, %v44_v7, 0.0 }
  0x23   :  { %v79_v17 = vadd.f32 %v72_v14, %v71_v13  ;;  %v82_v18 = vsel %vm81_vm1, %v74_v16, 0.0  ;;  %vm67_vm7 = vcmp.ne.s32.totalorder %v59_v23, 0  ;;  %vm68_vm8 = vcmp.ne.s32.totalorder %v60_v24, 0 }
  0x24   :  { %vm69_vm9 = vcmp.ne.s32.totalorder %v61_v25, 0  ;;  %vm70_vm10 = vcmp.ne.s32.totalorder %v62_v26, 0  ;;  %v75_v30 = vsel %vm67_vm7, %v45_v20, 0.0  ;;  %v76_v31 = vsel %vm68_vm8, %v46_v21, 0.0 }
  0x25   :  { %v80_v27 = vadd.f32 %v79_v17, %v73_v15  ;;  %v77_v32 = vsel %vm69_vm9, %v47_v22, 0.0  ;;  %v78_v33 = vsel %vm70_vm10, %v48_v28, 0.0  ;;  %v86_v34 = vadd.f32 %v76_v31, %v75_v30 }
  0x26   :  { %v88_v35 = vsel %vm81_vm1, %v78_v33, 0.0 }
  0x27   :  { %v83_v29 = vadd.f32 %v82_v18, %v80_v27  ;;  %v87_v36 = vadd.f32 %v86_v34, %v77_v32 }
  0x29   :  { %84 = vadd.xlane.f32.xlu0 %v83_v29  ;;  %v89_v37 = vadd.f32 %v88_v35, %v87_v36 }
  0x2d   :  { %90 = vadd.xlane.f32.xlu0 %v89_v37 }
  0xb2   :  { %v85_v38 = vpop.xlane.xlu0 %84 }
  0xb3   :  { %93 = vst.msk [vmem:[%s196_s2] sm:$0xff] %vm92_vm11, %v85_v38 }
  0xb6   :  { %v91_v39 = vpop.xlane.xlu0 %90 }
  0xb7   :  { %94 = vst.msk [vmem:[%s196_s2 + $0x8] sm:$0xff] %vm92_vm11, %v91_v39 }
  0xb8   :  { %99 = vsyncpa [#allocation3], 1 }
  0xb9   :  { %100 = vsyncpa [#allocation5], 1 }

</bundles_post_ra>
